<compile_context>
chip_gen: v7x
topology: tpu7x:2x2x1
jax: 0.10.0
libtpu: 0.0.40
codegen_flags: <defaults>
</compile_context>

<pallas_src>
import jax
import jax.numpy as jnp
from jax.experimental import pallas as pl
from jax.experimental.pallas import tpu as pltpu


ATT_THRESHOLD = 0.1
LANE = 128


def roberta_gcn_kernel(hs_ref, mask_ref, w1_ref, b1_ref, w2_ref, b2_ref,
                       wc_ref, bc_ref, o_ref):
    # hs_ref:   (Bb, S, Ep)  f32  -- block of graphs' node features
    # mask_ref: (Bb, S, 1)   f32  -- attention mask as a column (pooling only)
    x32 = hs_ref[...]
    x = x32.astype(jnp.bfloat16)                                  # bf16 MXU operand
    mcol = mask_ref[...]                                          # (Bb, S, 1) f32
    Bb, S, Ep = x.shape

    # ---- attention graph, built directly in TRANSPOSED layout --------------
    # logits = X X^T is symmetric, so a column-softmax (reduce over axis 1)
    # equals the transpose of the reference row-softmax: attn_t[i,j] = attn[j,i].
    logits = jax.lax.dot_general(
        x, x, (((2,), (2,)), ((0,), (0,))),
        preferred_element_type=jnp.float32)                       # (Bb, S, S) f32
    cmax = jnp.max(logits, axis=1, keepdims=True)                 # (Bb, 1, S)
    e = jnp.exp(logits - cmax)                                    # (Bb, S, S) f32
    sum_e = jnp.sum(e, axis=1, keepdims=True)                     # (Bb, 1, S)

    # Edge selection in exact f32, independent of the reciprocal's accuracy:
    # attn > thr  <=>  e > thr * sum_e.
    edge = e > (ATT_THRESHOLD * sum_e)                            # (Bb, S, S) bool
    # The weights themselves feed bf16 matmuls, so the EUP approx reciprocal
    # (error ~2^-12, below bf16 precision) is fine here.
    attn_t = (e * pl.reciprocal(sum_e, approx=True)).astype(jnp.bfloat16)

    # Thresholded adjacency + GCN self loops (PyG add_remaining_self_loops:
    # keep an existing self-edge's weight, fill missing self loops with 1.0).
    eye = (jax.lax.broadcasted_iota(jnp.int32, (S, S), 0) ==
           jax.lax.broadcasted_iota(jnp.int32, (S, S), 1)).astype(jnp.bfloat16)
    adj_t = jnp.where(edge, attn_t, eye)                          # (Bb,S,S) bf16 = A_hat^T

    # Symmetric normalization. deg[c] = sum_r A_hat[r,c] = row-sum of A_hat^T,
    # accumulated in f32, landing directly in the (Bb, S, 1) column layout.
    deg_col = jnp.sum(adj_t.astype(jnp.float32), axis=2, keepdims=True)
    dinv_col = jax.lax.rsqrt(deg_col)                             # (Bb, S, 1) f32

    w1 = w1_ref[...]                                              # (Ep, H1p) bf16
    w2 = w2_ref[...]                                              # (H1p,H2p) bf16
    wc = wc_ref[...]                                              # (H2p,Cp)  bf16
    H1p, H2p, Cp = w1.shape[1], w2.shape[1], wc.shape[1]

    # ---- GCN layer 1: relu( D^-1/2 A_hat^T D^-1/2 (X W1) + b1 ) ------------
    xw1 = jax.lax.dot_general(
        x.reshape(Bb * S, Ep), w1, (((1,), (0,)), ((), ())),
        preferred_element_type=jnp.float32).reshape(Bb, S, H1p)
    sxw1 = (dinv_col * xw1).astype(jnp.bfloat16)
    agg1 = jax.lax.dot_general(
        adj_t, sxw1, (((2,), (1,)), ((0,), (0,))),
        preferred_element_type=jnp.float32)                       # (Bb, S, H1p)
    h1 = jnp.maximum(dinv_col * agg1 + b1_ref[...], 0.0)
    # dropout(p=0.2) -> identity at inference; bn1 -> nn.Identity

    # ---- GCN layer 2 --------------------------------------------------------
    h1w2 = jax.lax.dot_general(
        h1.astype(jnp.bfloat16).reshape(Bb * S, H1p), w2,
        (((1,), (0,)), ((), ())),
        preferred_element_type=jnp.float32).reshape(Bb, S, H2p)
    sxw2 = (dinv_col * h1w2).astype(jnp.bfloat16)
    agg2 = jax.lax.dot_general(
        adj_t, sxw2, (((2,), (1,)), ((0,), (0,))),
        preferred_element_type=jnp.float32)
    h2 = dinv_col * agg2 + b2_ref[...]                            # (Bb, S, H2p) f32

    # ---- masked mean pooling on the VPU (sublane reduction over S) ---------
    msum = jnp.sum(mcol, axis=1, keepdims=True)                   # (Bb, 1, 1)
    pooled = jnp.sum(h2 * mcol, axis=1, keepdims=True)            # (Bb, 1, H2p) f32
    gemb = (pooled * pl.reciprocal(msum, approx=True)).reshape(Bb, H2p)

    # ---- classifier + sigmoid -----------------------------------------------
    logit = jax.lax.dot_general(
        gemb.astype(jnp.bfloat16), wc, (((1,), (0,)), ((), ())),
        preferred_element_type=jnp.float32) + bc_ref[...]         # (Bb, Cp)
    o_ref[...] = jax.nn.sigmoid(logit).reshape(Bb, 1, Cp)


# --------------------------------------------------------------------------- #
# Wrapper: generation-aware tiling + padding
# --------------------------------------------------------------------------- #

def _round_up(n, m):
    return ((n + m - 1) // m) * m


def _pad_to(a, shape):
    pads = [(0, t - s) for s, t in zip(a.shape, shape)]
    if all(p == (0, 0) for p in pads):
        return a
    return jnp.pad(a, pads)


def _tpu_generation():
    """Best-effort (vmem_capacity_bytes, tensorcores_per_device, mxu_n)."""
    kind = ""
    try:
        kind = jax.devices()[0].device_kind.lower()
    except Exception:
        pass
    vmem_cap = None
    try:
        info = pltpu.get_tpu_info()
        v = getattr(info, "vmem_capacity_bytes", None)
        if v:
            vmem_cap = int(v)
    except Exception:
        pass
    is_v7 = ("v7" in kind) or ("7x" in kind)
    if vmem_cap is None:
        vmem_cap = 64 * 2**20 if is_v7 else 128 * 2**20
    num_cores = 2 if (is_v7 or "v4" in kind or "v5p" in kind) else 1
    mxu_n = 256 if (is_v7 or "v6" in kind) else 128
    return vmem_cap, num_cores, mxu_n


def _feature_pad(d, mxu_n):
    # 128-lane padding always; round up to the MXU N-width (256 on v6e/v7x)
    # only when the true dim already exceeds 128.
    if d <= LANE:
        return LANE
    return _round_up(d, max(mxu_n, LANE))


def _pick_block_b(B, S, Ep, H1p, H2p, Cp, vmem_limit, num_cores):
    """Largest divisor of B whose per-block working set fits the VMEM budget."""
    per_graph = (8 * S * Ep          # f32 hs block, double-buffered input
                 + 2 * S * Ep        # bf16 in-kernel cast of x
                 + 12 * S * S        # logits/e (f32) + attn/adj (bf16) chain
                 + 14 * S * H1p      # xw1/agg1/h1 f32 + bf16 staging
                 + 12 * S * H2p)     # layer-2 temporaries
    weights = 4 * (Ep * H1p + H1p * H2p + H2p * Cp) + 8 * (H1p + H2p + Cp)
    budget = int(0.7 * vmem_limit) - weights
    cap = max(1, budget // per_graph)
    cap = int(min(cap, B))
    divs = [d for d in range(1, cap + 1) if B % d == 0]
    bb = divs[-1] if divs else 1
    if num_cores > 1 and bb > 1:
        # Prefer a grid-step count that splits evenly across TensorCores,
        # as long as it does not shrink the block by more than 2x.
        even = [d for d in divs if (B // d) % num_cores == 0]
        if even and even[-1] * 2 >= bb:
            bb = even[-1]
    return bb


def roberta_gcn_forward(hidden_states, attention_mask, params, *, block_b=None):
    """hidden_states: (B, S, E) f32; attention_mask: (B, S) {0,1}."""
    B, S, E = hidden_states.shape
    W1, b1, W2, b2, Wc, bc = params
    H1, H2, C = W1.shape[1], W2.shape[1], Wc.shape[1]

    vmem_cap, num_cores, mxu_n = _tpu_generation()
    # ~48 MiB on v7x (64 MiB/TC), ~96 MiB on v5e/v6e (128 MiB/TC).
    vmem_limit = max(32 * 2**20, min(int(0.75 * vmem_cap), 100 * 2**20))

    # Lane-dense padding of every feature dim (zero padding is exact here).
    Ep = _feature_pad(E, mxu_n)
    H1p = _feature_pad(H1, mxu_n)
    H2p = _feature_pad(H2, mxu_n)
    Cp = _feature_pad(C, mxu_n)

    if block_b is None:
        block_b = _pick_block_b(B, S, Ep, H1p, H2p, Cp, vmem_limit, num_cores)
    block_b = max(1, min(int(block_b), B))
    while B % block_b != 0:       # keep a divisor of B: no batch padding needed
        block_b -= 1
    nblk = B // block_b

    # hidden_states stay f32 (cast to bf16 in-kernel -> no extra wrapper pass
    # over the big activation when E is already lane-aligned).
    hs = _pad_to(hidden_states.astype(jnp.float32), (B, S, Ep))
    mask = attention_mask.astype(jnp.float32).reshape(B, S, 1)

    w1 = _pad_to(W1.astype(jnp.float32), (Ep, H1p)).astype(jnp.bfloat16)
    b1p = _pad_to(b1.reshape(1, H1).astype(jnp.float32), (1, H1p))
    w2 = _pad_to(W2.astype(jnp.float32), (H1p, H2p)).astype(jnp.bfloat16)
    b2p = _pad_to(b2.reshape(1, H2).astype(jnp.float32), (1, H2p))
    wc = _pad_to(Wc.astype(jnp.float32), (H2p, Cp)).astype(jnp.bfloat16)
    bcp = _pad_to(bc.reshape(1, C).astype(jnp.float32), (1, Cp))

    flops = int(2 * B * S * (S * Ep + Ep * H1p + S * H1p + H1p * H2p + S * H2p)
                + 2 * B * H2p * Cp)
    transcendentals = int(B * S * S + B * S + B * Cp)
    bytes_accessed = int(hs.size * 4 + mask.size * 4
                         + (w1.size + w2.size + wc.size) * 2
                         + (b1p.size + b2p.size + bcp.size) * 4
                         + B * Cp * 4)

    out = pl.pallas_call(
        roberta_gcn_kernel,
        out_shape=jax.ShapeDtypeStruct((B, 1, Cp), jnp.float32),
        grid=(nblk,),
        in_specs=[
            pl.BlockSpec((block_b, S, Ep), lambda i: (i, 0, 0)),   # hidden states (f32)
            pl.BlockSpec((block_b, S, 1), lambda i: (i, 0, 0)),    # mask column
            pl.BlockSpec((Ep, H1p), lambda i: (0, 0)),             # W1 (resident)
            pl.BlockSpec((1, H1p), lambda i: (0, 0)),              # b1
            pl.BlockSpec((H1p, H2p), lambda i: (0, 0)),            # W2
            pl.BlockSpec((1, H2p), lambda i: (0, 0)),              # b2
            pl.BlockSpec((H2p, Cp), lambda i: (0, 0)),             # Wc
            pl.BlockSpec((1, Cp), lambda i: (0, 0)),               # bc
        ],
        out_specs=pl.BlockSpec((block_b, 1, Cp), lambda i: (i, 0, 0)),
        compiler_params=pltpu.CompilerParams(
            dimension_semantics=("parallel",),
            vmem_limit_bytes=vmem_limit,
        ),
        cost_estimate=pl.CostEstimate(
            flops=flops,
            transcendentals=transcendentals,
            bytes_accessed=bytes_accessed,
        ),
    )(hs, mask, w1, b1p, w2, b2p, wc, bcp)
    return out[:, 0, :C]


def init_params(key, embed_dim, hidden_dims, num_classes):
    k1, k2, k3 = jax.random.split(key, 3)
    h1, h2 = hidden_dims
    W1 = jax.random.normal(k1, (embed_dim, h1), jnp.float32) * (1.0 / jnp.sqrt(embed_dim))
    b1 = jnp.zeros((1, h1), jnp.float32)
    W2 = jax.random.normal(k2, (h1, h2), jnp.float32) * (1.0 / jnp.sqrt(h1))
    b2 = jnp.zeros((1, h2), jnp.float32)
    Wc = jax.random.normal(k3, (h2, num_classes), jnp.float32) * (1.0 / jnp.sqrt(h2))
    bc = jnp.zeros((1, num_classes), jnp.float32)
    return (W1, b1, W2, b2, Wc, bc)


if __name__ == "__main__":
    # Small shapes consistent with the module's forward:
    # batch=2, seq=8, embed=32, hidden_dims=[32, 16], num_classes=1
    B, S, E = 2, 8, 32
    hidden_dims = [32, 16]
    num_classes = 1

    key = jax.random.PRNGKey(0)
    k_hs, k_p = jax.random.split(key)

    # Stand-in for RobertaModel(...).last_hidden_state (frozen encoder).
    hidden_states = jax.random.normal(k_hs, (B, S, E), jnp.float32)
    # Attention mask: first sample fully valid, second padded after 5 tokens.
    attention_mask = jnp.array(
        [[1, 1, 1, 1, 1, 1, 1, 1],
         [1, 1, 1, 1, 1, 0, 0, 0]], dtype=jnp.int32)

    params = init_params(k_p, E, hidden_dims, num_classes)

    out = roberta_gcn_forward(hidden_states, attention_mask, params)
    out = jax.block_until_ready(out)

    assert out.shape == (B, num_classes)
    assert bool(jnp.all(jnp.isfinite(out)))
    assert bool(jnp.all((out > 0.0) & (out < 1.0)))
    print("KERNEL_OK")
</pallas_src>

<mosaic_0001>
module attributes {stable_mosaic.version = 11 : i64} {
  func.func @roberta_gcn_kernel(%arg0: i32, %arg1: memref<2x8x128xf32, #tpu.memory_space<vmem>>, %arg2: memref<2x8x1xf32, #tpu.memory_space<vmem>>, %arg3: memref<128x128xbf16, #tpu.memory_space<vmem>>, %arg4: memref<1x128xf32, #tpu.memory_space<vmem>>, %arg5: memref<128x128xbf16, #tpu.memory_space<vmem>>, %arg6: memref<1x128xf32, #tpu.memory_space<vmem>>, %arg7: memref<128x128xbf16, #tpu.memory_space<vmem>>, %arg8: memref<1x128xf32, #tpu.memory_space<vmem>>, %arg9: memref<2x1x128xf32, #tpu.memory_space<vmem>>) attributes {dimension_semantics = [#tpu.dimension_semantics<parallel>], iteration_bounds = array<i64: 1>, scalar_prefetch = 0 : i64, scratch_operands = 0 : i64, tpu.core_type = #tpu.core_type<tc>, window_params = [{transform_indices = @transform_0, window_bounds = array<i64: 2, 8, 128>}, {transform_indices = @transform_1, window_bounds = array<i64: 2, 8, 1>}, {pipeline_mode = #tpu.pipeline_mode<synchronous>, transform_indices = @transform_2, window_bounds = array<i64: 128, 128>}, {pipeline_mode = #tpu.pipeline_mode<synchronous>, transform_indices = @transform_3, window_bounds = array<i64: 1, 128>}, {pipeline_mode = #tpu.pipeline_mode<synchronous>, transform_indices = @transform_4, window_bounds = array<i64: 128, 128>}, {pipeline_mode = #tpu.pipeline_mode<synchronous>, transform_indices = @transform_5, window_bounds = array<i64: 1, 128>}, {pipeline_mode = #tpu.pipeline_mode<synchronous>, transform_indices = @transform_6, window_bounds = array<i64: 128, 128>}, {pipeline_mode = #tpu.pipeline_mode<synchronous>, transform_indices = @transform_7, window_bounds = array<i64: 1, 128>}, {transform_indices = @transform_8, window_bounds = array<i64: 2, 1, 128>}]} {
    %c0 = arith.constant 0 : index
    %c0_0 = arith.constant 0 : index
    %c0_1 = arith.constant 0 : index
    %0 = vector.load %arg1[%c0, %c0_0, %c0_1] : memref<2x8x128xf32, #tpu.memory_space<vmem>>, vector<2x8x128xf32>
    %1 = arith.truncf %0 : vector<2x8x128xf32> to vector<2x8x128xbf16>
    %c0_2 = arith.constant 0 : index
    %c0_3 = arith.constant 0 : index
    %c0_4 = arith.constant 0 : index
    %2 = vector.load %arg2[%c0_2, %c0_3, %c0_4] : memref<2x8x1xf32, #tpu.memory_space<vmem>>, vector<2x8x1xf32>
    %cst = arith.constant dense<0.000000e+00> : vector<2x8x8xf32>
    %3 = tpu.matmul %1, %1, %cst {dimension_numbers = #tpu.dot_dimension_numbers<[2], [2], [1], [1], [0, 0, 0, 1, 1, 1], [0], [0]>} : vector<2x8x128xbf16>, vector<2x8x128xbf16>, vector<2x8x8xf32> -> vector<2x8x8xf32>
    %cst_5 = arith.constant dense<0xFF800000> : vector<2x8xf32>
    %4 = vector.multi_reduction <maximumf>, %3, %cst_5 [1] : vector<2x8x8xf32> to vector<2x8xf32>
    %5 = vector.shape_cast %4 : vector<2x8xf32> to vector<2x1x8xf32>
    %6 = vector.broadcast %5 : vector<2x1x8xf32> to vector<2x8x8xf32>
    %7 = arith.subf %3, %6 : vector<2x8x8xf32>
    %8 = math.exp %7 : vector<2x8x8xf32>
    %cst_6 = arith.constant dense<0.000000e+00> : vector<2x8xf32>
    %9 = vector.multi_reduction <add>, %8, %cst_6 [1] : vector<2x8x8xf32> to vector<2x8xf32>
    %10 = vector.shape_cast %9 : vector<2x8xf32> to vector<2x1x8xf32>
    %cst_7 = arith.constant 1.000000e-01 : f32
    %11 = vector.broadcast %cst_7 : f32 to vector<2x1x8xf32>
    %12 = arith.mulf %11, %10 : vector<2x1x8xf32>
    %13 = vector.broadcast %12 : vector<2x1x8xf32> to vector<2x8x8xf32>
    %14 = arith.cmpf ogt, %8, %13 : vector<2x8x8xf32>
    %15 = tpu.reciprocal %10 {approx = true} : vector<2x1x8xf32> -> vector<2x1x8xf32>
    %16 = vector.broadcast %15 : vector<2x1x8xf32> to vector<2x8x8xf32>
    %17 = arith.mulf %8, %16 : vector<2x8x8xf32>
    %18 = arith.truncf %17 : vector<2x8x8xf32> to vector<2x8x8xbf16>
    %19 = tpu.iota {dimensions = array<i32: 0>} : vector<8x8xi32>
    %20 = tpu.iota {dimensions = array<i32: 1>} : vector<8x8xi32>
    %21 = arith.cmpi eq, %19, %20 : vector<8x8xi32>
    %22 = arith.extui %21 : vector<8x8xi1> to vector<8x8xi32>
    %23 = arith.sitofp %22 : vector<8x8xi32> to vector<8x8xf32>
    %24 = arith.truncf %23 : vector<8x8xf32> to vector<8x8xbf16>
    %25 = vector.shape_cast %24 : vector<8x8xbf16> to vector<1x8x8xbf16>
    %26 = vector.broadcast %25 : vector<1x8x8xbf16> to vector<2x8x8xbf16>
    %27 = arith.select %14, %18, %26 : vector<2x8x8xi1>, vector<2x8x8xbf16>
    %28 = arith.extf %27 : vector<2x8x8xbf16> to vector<2x8x8xf32>
    %cst_8 = arith.constant dense<0.000000e+00> : vector<2x8xf32>
    %29 = vector.multi_reduction <add>, %28, %cst_8 [2] : vector<2x8x8xf32> to vector<2x8xf32>
    %30 = vector.shape_cast %29 : vector<2x8xf32> to vector<2x8x1xf32>
    %31 = math.rsqrt %30 : vector<2x8x1xf32>
    %c0_9 = arith.constant 0 : index
    %c0_10 = arith.constant 0 : index
    %32 = vector.load %arg3[%c0_9, %c0_10] : memref<128x128xbf16, #tpu.memory_space<vmem>>, vector<128x128xbf16>
    %c0_11 = arith.constant 0 : index
    %c0_12 = arith.constant 0 : index
    %33 = vector.load %arg5[%c0_11, %c0_12] : memref<128x128xbf16, #tpu.memory_space<vmem>>, vector<128x128xbf16>
    %c0_13 = arith.constant 0 : index
    %c0_14 = arith.constant 0 : index
    %34 = vector.load %arg7[%c0_13, %c0_14] : memref<128x128xbf16, #tpu.memory_space<vmem>>, vector<128x128xbf16>
    %35 = vector.shape_cast %1 : vector<2x8x128xbf16> to vector<16x128xbf16>
    %cst_15 = arith.constant dense<0.000000e+00> : vector<16x128xf32>
    %36 = tpu.matmul %35, %32, %cst_15 {dimension_numbers = #tpu.dot_dimension_numbers<[1], [0], [0], [1], [0, 0, 1, 1], [], []>} : vector<16x128xbf16>, vector<128x128xbf16>, vector<16x128xf32> -> vector<16x128xf32>
    %37 = vector.shape_cast %36 : vector<16x128xf32> to vector<2x8x128xf32>
    %38 = vector.broadcast %31 : vector<2x8x1xf32> to vector<2x8x128xf32>
    %39 = arith.mulf %38, %37 : vector<2x8x128xf32>
    %40 = arith.truncf %39 : vector<2x8x128xf32> to vector<2x8x128xbf16>
    %cst_16 = arith.constant dense<0.000000e+00> : vector<2x8x128xf32>
    %41 = tpu.matmul %27, %40, %cst_16 {dimension_numbers = #tpu.dot_dimension_numbers<[2], [1], [1], [2], [0, 0, 0, 1, 1, 2], [0], [0]>} : vector<2x8x8xbf16>, vector<2x8x128xbf16>, vector<2x8x128xf32> -> vector<2x8x128xf32>
    %42 = vector.broadcast %31 : vector<2x8x1xf32> to vector<2x8x128xf32>
    %43 = arith.mulf %42, %41 : vector<2x8x128xf32>
    %c0_17 = arith.constant 0 : index
    %c0_18 = arith.constant 0 : index
    %44 = vector.load %arg4[%c0_17, %c0_18] : memref<1x128xf32, #tpu.memory_space<vmem>>, vector<1x128xf32>
    %45 = vector.shape_cast %44 : vector<1x128xf32> to vector<1x1x128xf32>
    %46 = vector.broadcast %45 : vector<1x1x128xf32> to vector<2x8x128xf32>
    %47 = arith.addf %43, %46 : vector<2x8x128xf32>
    %cst_19 = arith.constant 0.000000e+00 : f32
    %48 = vector.broadcast %cst_19 : f32 to vector<2x8x128xf32>
    %49 = arith.maximumf %47, %48 : vector<2x8x128xf32>
    %50 = arith.truncf %49 : vector<2x8x128xf32> to vector<2x8x128xbf16>
    %51 = vector.shape_cast %50 : vector<2x8x128xbf16> to vector<16x128xbf16>
    %cst_20 = arith.constant dense<0.000000e+00> : vector<16x128xf32>
    %52 = tpu.matmul %51, %33, %cst_20 {dimension_numbers = #tpu.dot_dimension_numbers<[1], [0], [0], [1], [0, 0, 1, 1], [], []>} : vector<16x128xbf16>, vector<128x128xbf16>, vector<16x128xf32> -> vector<16x128xf32>
    %53 = vector.shape_cast %52 : vector<16x128xf32> to vector<2x8x128xf32>
    %54 = vector.broadcast %31 : vector<2x8x1xf32> to vector<2x8x128xf32>
    %55 = arith.mulf %54, %53 : vector<2x8x128xf32>
    %56 = arith.truncf %55 : vector<2x8x128xf32> to vector<2x8x128xbf16>
    %cst_21 = arith.constant dense<0.000000e+00> : vector<2x8x128xf32>
    %57 = tpu.matmul %27, %56, %cst_21 {dimension_numbers = #tpu.dot_dimension_numbers<[2], [1], [1], [2], [0, 0, 0, 1, 1, 2], [0], [0]>} : vector<2x8x8xbf16>, vector<2x8x128xbf16>, vector<2x8x128xf32> -> vector<2x8x128xf32>
    %58 = vector.broadcast %31 : vector<2x8x1xf32> to vector<2x8x128xf32>
    %59 = arith.mulf %58, %57 : vector<2x8x128xf32>
    %c0_22 = arith.constant 0 : index
    %c0_23 = arith.constant 0 : index
    %60 = vector.load %arg6[%c0_22, %c0_23] : memref<1x128xf32, #tpu.memory_space<vmem>>, vector<1x128xf32>
    %61 = vector.shape_cast %60 : vector<1x128xf32> to vector<1x1x128xf32>
    %62 = vector.broadcast %61 : vector<1x1x128xf32> to vector<2x8x128xf32>
    %63 = arith.addf %59, %62 : vector<2x8x128xf32>
    %cst_24 = arith.constant dense<0.000000e+00> : vector<2x1xf32>
    %64 = vector.multi_reduction <add>, %2, %cst_24 [1] : vector<2x8x1xf32> to vector<2x1xf32>
    %65 = vector.shape_cast %64 : vector<2x1xf32> to vector<2x1x1xf32>
    %66 = vector.broadcast %2 : vector<2x8x1xf32> to vector<2x8x128xf32>
    %67 = arith.mulf %63, %66 : vector<2x8x128xf32>
    %cst_25 = arith.constant dense<0.000000e+00> : vector<2x128xf32>
    %68 = vector.multi_reduction <add>, %67, %cst_25 [1] : vector<2x8x128xf32> to vector<2x128xf32>
    %69 = vector.shape_cast %68 : vector<2x128xf32> to vector<2x1x128xf32>
    %70 = tpu.reciprocal %65 {approx = true} : vector<2x1x1xf32> -> vector<2x1x1xf32>
    %71 = vector.broadcast %70 : vector<2x1x1xf32> to vector<2x1x128xf32>
    %72 = arith.mulf %69, %71 : vector<2x1x128xf32>
    %73 = vector.shape_cast %72 : vector<2x1x128xf32> to vector<2x128xf32>
    %74 = arith.truncf %73 : vector<2x128xf32> to vector<2x128xbf16>
    %cst_26 = arith.constant dense<0.000000e+00> : vector<2x128xf32>
    %75 = tpu.matmul %74, %34, %cst_26 {dimension_numbers = #tpu.dot_dimension_numbers<[1], [0], [0], [1], [0, 0, 1, 1], [], []>} : vector<2x128xbf16>, vector<128x128xbf16>, vector<2x128xf32> -> vector<2x128xf32>
    %c0_27 = arith.constant 0 : index
    %c0_28 = arith.constant 0 : index
    %76 = vector.load %arg8[%c0_27, %c0_28] : memref<1x128xf32, #tpu.memory_space<vmem>>, vector<1x128xf32>
    %77 = vector.broadcast %76 : vector<1x128xf32> to vector<2x128xf32>
    %78 = arith.addf %75, %77 : vector<2x128xf32>
    %79 = arith.negf %78 : vector<2x128xf32>
    %80 = math.exp %79 : vector<2x128xf32>
    %cst_29 = arith.constant 1.000000e+00 : f32
    %81 = vector.broadcast %cst_29 : f32 to vector<2x128xf32>
    %82 = arith.addf %81, %80 : vector<2x128xf32>
    %83 = arith.divf %81, %82 : vector<2x128xf32>
    %84 = vector.shape_cast %83 : vector<2x128xf32> to vector<2x1x128xf32>
    %c0_30 = arith.constant 0 : index
    %c0_31 = arith.constant 0 : index
    %c0_32 = arith.constant 0 : index
    %85 = vector.load %arg9[%c0_30, %c0_31, %c0_32] : memref<2x1x128xf32, #tpu.memory_space<vmem>>, vector<2x1x128xf32>
    tpu.vector_store %arg9[%c0_30, %c0_31, %c0_32], %84 {strides = array<i32>} : memref<2x1x128xf32, #tpu.memory_space<vmem>>, vector<2x1x128xf32>,
    return
  }
  func.func @transform_0(%arg0: i32) -> (i32, i32, i32) {
    %c0_i32 = arith.constant 0 : i32
    %c0_i32_0 = arith.constant 0 : i32
    %c0_i32_1 = arith.constant 0 : i32
    return %arg0, %c0_i32, %c0_i32_0 : i32, i32, i32
  }
  func.func @transform_1(%arg0: i32) -> (i32, i32, i32) {
    %c0_i32 = arith.constant 0 : i32
    %c0_i32_0 = arith.constant 0 : i32
    %c0_i32_1 = arith.constant 0 : i32
    return %arg0, %c0_i32, %c0_i32_0 : i32, i32, i32
  }
  func.func @transform_2(%arg0: i32) -> (i32, i32) {
    %c0_i32 = arith.constant 0 : i32
    %c0_i32_0 = arith.constant 0 : i32
    %c0_i32_1 = arith.constant 0 : i32
    return %c0_i32, %c0_i32_0 : i32, i32
  }
  func.func @transform_3(%arg0: i32) -> (i32, i32) {
    %c0_i32 = arith.constant 0 : i32
    %c0_i32_0 = arith.constant 0 : i32
    %c0_i32_1 = arith.constant 0 : i32
    return %c0_i32, %c0_i32_0 : i32, i32
  }
  func.func @transform_4(%arg0: i32) -> (i32, i32) {
    %c0_i32 = arith.constant 0 : i32
    %c0_i32_0 = arith.constant 0 : i32
    %c0_i32_1 = arith.constant 0 : i32
    return %c0_i32, %c0_i32_0 : i32, i32
  }
  func.func @transform_5(%arg0: i32) -> (i32, i32) {
    %c0_i32 = arith.constant 0 : i32
    %c0_i32_0 = arith.constant 0 : i32
    %c0_i32_1 = arith.constant 0 : i32
    return %c0_i32, %c0_i32_0 : i32, i32
  }
  func.func @transform_6(%arg0: i32) -> (i32, i32) {
    %c0_i32 = arith.constant 0 : i32
    %c0_i32_0 = arith.constant 0 : i32
    %c0_i32_1 = arith.constant 0 : i32
    return %c0_i32, %c0_i32_0 : i32, i32
  }
  func.func @transform_7(%arg0: i32) -> (i32, i32) {
    %c0_i32 = arith.constant 0 : i32
    %c0_i32_0 = arith.constant 0 : i32
    %c0_i32_1 = arith.constant 0 : i32
    return %c0_i32, %c0_i32_0 : i32, i32
  }
  func.func @transform_8(%arg0: i32) -> (i32, i32, i32) {
    %c0_i32 = arith.constant 0 : i32
    %c0_i32_0 = arith.constant 0 : i32
    %c0_i32_1 = arith.constant 0 : i32
    return %arg0, %c0_i32, %c0_i32_0 : i32, i32, i32
  }
}

</mosaic_0001>

<bundles_post_ra>
// kernel: tpu_custom_call.1
= control target key start
LH: loop header
LB: loop body
LE: loop exit
PB: predicated region body
PF: predicated region fallthrough
CT: control target
= control target key end

     0   :  { %13 = vsyncpa [#allocation3], 0  ;;  %s1690_s0 = inlined_call_operand.hbm [shape: f32[2,8,128], index: 0, kind: input, shape index: {}]   ;;  %s1691_s1 = inlined_call_operand.hbm [shape: f32[2,8,1], index: 1, kind: input, shape index: {}]   ;;  %s1692_s2 = inlined_call_operand.hbm [shape: bf16[128,128], index: 2, kind: input, shape index: {}]   ;;  %s1693_s3 = inlined_call_operand.hbm [shape: f32[1,128], index: 3, kind: input, shape index: {}]   ;;  %s1694_s4 = inlined_call_operand.hbm [shape: bf16[128,128], index: 4, kind: input, shape index: {}]   ;;  %s1695_s5 = inlined_call_operand.hbm [shape: f32[1,128], index: 5, kind: input, shape index: {}]   ;;  %s1696_s6 = inlined_call_operand.hbm [shape: bf16[128,128], index: 6, kind: input, shape index: {}]   ;;  %s1697_s7 = inlined_call_operand.hbm [shape: f32[1,128], index: 7, kind: input, shape index: {}]   ;;  %s1698_s8 = inlined_call_operand.hbm [shape: f32[2,1,128], index: 8, kind: output, shape index: {}]  }
   0x1   :  { %14 = vsyncpa [#allocation6], 0 }
   0x2   :  { %15 = vsyncpa [#allocation9], 0 }
   0x3   :  { %16 = vsyncpa [#allocation12], 0 }
   0x4   :  { %17 = vsyncpa [#allocation15], 0 }
   0x5   :  { %18 = vsyncpa [#allocation4], 0  ;;  %s1399_s27 = smov [#allocation5]   ;;  %s1400_s29 = smov [#allocation8]  }
   0x6   :  { %s36_s28 = sshll.u32 %s1399_s27, 4  ;;  %s61_s30 = sshll.u32 %s1400_s29, 4  ;;  %s37_s28 = int_to_ptr.vmem [resolvable:$true] %s36_s28  ;;  %s1463_s30 = int_to_ptr.vmem [resolvable:$true] %s61_s30 }
   0x7   :  { %s1189_s11 = scalar_lea.hbm %s1691_s1, 256 }
   0x8   :  { %p1190_p0 = scmp.ne.s32.totalorder %s1691_s1, %s1189_s11  ;;  %p1193_p1 = scmp.lt.u32.totalorder %s1189_s11, %s1691_s1 }
   0xa   :  { %p1195_p2 = pnand %p1193_p1, %p1190_p0 }
   0xc   :  { %1198 = shalt.err (!%p1195_p2)
}
   0xd   :  { %s1199_s16 = scalar_lea.vmem %s37_s28, 256  ;;  %p1204_p4 = scmp.lt.s32.totalorder %s37_s28, %s37_s28 }
   0xe   :  { %p1200_p3 = scmp.ne.s32.totalorder %s37_s28, %s1199_s16  ;;  %p1205_p5 = scmp.lt.s32.totalorder %s1199_s16, %s1199_s16 }
  0x10   :  { %p1206_p6 = por %p1205_p5, %p1204_p4 }
  0x12   :  { %p1207_p7 = pnand %p1206_p6, %p1200_p3 }
  0x14   :  { %1210 = shalt.err (!%p1207_p7)
}
  0x15   :  { %s1401_s17 = smov 128   ;;  %s1402_s18 = smov 8  }
  0x16   :  { %42 = dma.hbm_to_vmem [thread:$0]  %s1691_s1, 256, %s37_s28, [#allocation6], %s1401_s17, %s1401_s17, %s1402_s18  }
  0x17   :  { %s1211_s23 = scalar_lea.hbm %s1693_s3, 16 }
  0x18   :  { %p1212_p8 = scmp.ne.s32.totalorder %s1693_s3, %s1211_s23  ;;  %p1215_p9 = scmp.lt.u32.totalorder %s1211_s23, %s1693_s3 }
  0x1a   :  { %p1217_p10 = pnand %p1215_p9, %p1212_p8 }
  0x1c   :  { %1220 = shalt.err (!%p1217_p10)
}
  0x1d   :  { %s1221_s29 = scalar_lea.vmem %s1463_s30, 16  ;;  %s1225_s1 = scalar_lea.vmem %s1463_s30, 32 }
  0x1e   :  { %p1222_p11 = scmp.ne.s32.totalorder %s1463_s30, %s1221_s29  ;;  %p1226_p12 = scmp.lt.s32.totalorder %s1463_s30, %s1463_s30 }
  0x1f   :  { %p1227_p13 = scmp.lt.s32.totalorder %s1225_s1, %s1221_s29 }
  0x21   :  { %p1228_p0 = por %p1227_p13, %p1226_p12 }
  0x23   :  { %p1229_p1 = pnand %p1228_p0, %p1222_p11 }
  0x25   :  { %1232 = shalt.err (!%p1229_p1)
}
  0x26   :  { %64 = dma.hbm_to_vmem [thread:$0]  %s1693_s3, 16, %s1463_s30, [#allocation9]  }
  0x27   :  { %s1403_s10 = smov [#allocation11]   ;;  %s1404_s12 = smov [#allocation2]  }
  0x28   :  { %s83_s11 = sshll.u32 %s1403_s10, 4  ;;  %s24_s13 = sshll.u32 %s1404_s12, 4  ;;  %s84_s11 = int_to_ptr.vmem [resolvable:$true] %s83_s11  ;;  %s1498_s13 = int_to_ptr.vmem [resolvable:$true] %s24_s13 }
  0x29   :  { %s1233_s16 = scalar_lea.hbm %s1695_s5, 16 }
  0x2a   :  { %p1234_p2 = scmp.ne.s32.totalorder %s1695_s5, %s1233_s16  ;;  %p1237_p3 = scmp.lt.u32.totalorder %s1233_s16, %s1695_s5 }
  0x2c   :  { %p1239_p4 = pnand %p1237_p3, %p1234_p2 }
  0x2e   :  { %1242 = shalt.err (!%p1239_p4)
}
  0x2f   :  { %s1243_s3 = scalar_lea.vmem %s84_s11, 16  ;;  %s1247_s30 = scalar_lea.vmem %s84_s11, 32 }
  0x30   :  { %p1244_p5 = scmp.ne.s32.totalorder %s84_s11, %s1243_s3  ;;  %p1248_p6 = scmp.lt.s32.totalorder %s84_s11, %s84_s11 }
  0x31   :  { %p1249_p7 = scmp.lt.s32.totalorder %s1247_s30, %s1243_s3 }
  0x33   :  { %p1250_p8 = por %p1249_p7, %p1248_p6 }
  0x35   :  { %p1251_p9 = pnand %p1250_p8, %p1244_p5 }
  0x37   :  { %1254 = shalt.err (!%p1251_p9)
}
  0x38   :  { %86 = dma.hbm_to_vmem [thread:$0]  %s1695_s5, 16, %s84_s11, [#allocation12]  }
  0x39   :  { %s1255_s27 = scalar_lea.hbm %s1690_s0, 256 }
  0x3a   :  { %p1256_p10 = scmp.ne.s32.totalorder %s1690_s0, %s1255_s27  ;;  %p1259_p11 = scmp.lt.u32.totalorder %s1255_s27, %s1690_s0 }
  0x3c   :  { %p1261_p12 = pnand %p1259_p11, %p1256_p10 }
  0x3e   :  { %1264 = shalt.err (!%p1261_p12)
}
  0x3f   :  { %s1265_s10 = scalar_lea.vmem %s1498_s13, 256  ;;  %p1270_p0 = scmp.lt.s32.totalorder %s1498_s13, %s1498_s13 }
  0x40   :  { %p1266_p13 = scmp.ne.s32.totalorder %s1498_s13, %s1265_s10  ;;  %p1271_p1 = scmp.lt.s32.totalorder %s1265_s10, %s1265_s10 }
  0x42   :  { %p1272_p2 = por %p1271_p1, %p1270_p0 }
  0x44   :  { %p1273_p3 = pnand %p1272_p2, %p1266_p13 }
  0x46   :  { %1276 = shalt.err (!%p1273_p3)
}
  0x47   :  { %30 = dma.hbm_to_vmem [thread:$0]  %s1690_s0, 256, %s1498_s13, [#allocation3], %s1401_s17, %s1401_s17, %s1402_s18  }
  0x48   :  { %s1405_s12 = smov [#allocation7]   ;;  %s1277_s19 = scalar_lea.hbm %s1692_s2, 1024 }
  0x49   :  { %s48_s14 = sshll.u32 %s1405_s12, 4  ;;  %p1278_p4 = scmp.ne.s32.totalorder %s1692_s2, %s1277_s19  ;;  %s49_s14 = int_to_ptr.vmem [resolvable:$true] %s48_s14 }
  0x4a   :  { %p1281_p5 = scmp.lt.u32.totalorder %s1277_s19, %s1692_s2 }
  0x4c   :  { %p1283_p6 = pnand %p1281_p5, %p1278_p4 }
  0x4e   :  { %1286 = shalt.err (!%p1283_p6)
}
  0x4f   :  { %s1287_s30 = scalar_lea.vmem %s49_s14, 1024  ;;  %p1292_p8 = scmp.lt.s32.totalorder %s49_s14, %s49_s14 }
  0x50   :  { %p1288_p7 = scmp.ne.s32.totalorder %s49_s14, %s1287_s30  ;;  %p1293_p9 = scmp.lt.s32.totalorder %s1287_s30, %s1287_s30 }
  0x52   :  { %p1294_p10 = por %p1293_p9, %p1292_p8 }
  0x54   :  { %p1295_p11 = pnand %p1294_p10, %p1288_p7 }
  0x56   :  { %1298 = shalt.err (!%p1295_p11)
}
  0x57   :  { %s1406_s0 = smov 64   ;;  %s1407_s17 = smov 4  }
  0x58   :  { %54 = dma.hbm_to_vmem [thread:$0]  %s1692_s2, 1024, %s49_s14, [#allocation6], %s1406_s0, %s1406_s0, %s1407_s17  }
  0x59   :  { %s1408_s23 = smov [#allocation10]   ;;  %s1409_s25 = smov [#allocation13]  }
  0x5a   :  { %s70_s24 = sshll.u32 %s1408_s23, 4  ;;  %s92_s26 = sshll.u32 %s1409_s25, 4  ;;  %s71_s24 = int_to_ptr.vmem [resolvable:$true] %s70_s24  ;;  %s93_s26 = int_to_ptr.vmem [resolvable:$true] %s92_s26 }
  0x5b   :  { %s1299_s1 = scalar_lea.hbm %s1694_s4, 1024 }
  0x5c   :  { %p1300_p12 = scmp.ne.s32.totalorder %s1694_s4, %s1299_s1  ;;  %p1303_p13 = scmp.lt.u32.totalorder %s1299_s1, %s1694_s4 }
  0x5e   :  { %p1305_p0 = pnand %p1303_p13, %p1300_p12 }
  0x60   :  { %1308 = shalt.err (!%p1305_p0)
}
  0x61   :  { %s1309_s2 = scalar_lea.vmem %s71_s24, 1024  ;;  %p1314_p2 = scmp.lt.s32.totalorder %s71_s24, %s71_s24 }
  0x62   :  { %p1310_p1 = scmp.ne.s32.totalorder %s71_s24, %s1309_s2  ;;  %p1315_p3 = scmp.lt.s32.totalorder %s1309_s2, %s1309_s2 }
  0x64   :  { %p1316_p4 = por %p1315_p3, %p1314_p2 }
  0x66   :  { %p1317_p5 = pnand %p1316_p4, %p1310_p1 }
  0x68   :  { %1320 = shalt.err (!%p1317_p5)
}
  0x69   :  { %76 = dma.hbm_to_vmem [thread:$0]  %s1694_s4, 1024, %s71_s24, [#allocation9], %s1406_s0, %s1406_s0, %s1407_s17  }
  0x6a   :  { %s1321_s16 = scalar_lea.hbm %s1696_s6, 1024 }
  0x6b   :  { %p1322_p6 = scmp.ne.s32.totalorder %s1696_s6, %s1321_s16  ;;  %p1325_p7 = scmp.lt.u32.totalorder %s1321_s16, %s1696_s6 }
  0x6d   :  { %p1327_p8 = pnand %p1325_p7, %p1322_p6 }
  0x6f   :  { %1330 = shalt.err (!%p1327_p8)
}
  0x70   :  { %s1331_s3 = scalar_lea.vmem %s93_s26, 1024  ;;  %p1336_p10 = scmp.lt.s32.totalorder %s93_s26, %s93_s26 }
  0x71   :  { %p1332_p9 = scmp.ne.s32.totalorder %s93_s26, %s1331_s3  ;;  %p1337_p11 = scmp.lt.s32.totalorder %s1331_s3, %s1331_s3 }
  0x73   :  { %p1338_p12 = por %p1337_p11, %p1336_p10 }
  0x75   :  { %p1339_p13 = pnand %p1338_p12, %p1332_p9 }
  0x77   :  { %1342 = shalt.err (!%p1339_p13)
}
  0x78   :  { %98 = dma.hbm_to_vmem [thread:$0]  %s1696_s6, 1024, %s93_s26, [#allocation12], %s1406_s0, %s1406_s0, %s1407_s17  }
  0x79   :  { %s1410_s18 = smov [#allocation14]   ;;  %s1343_s25 = scalar_lea.hbm %s1697_s7, 16 }
  0x7a   :  { %s105_s13 = sshll.u32 %s1410_s18, 4  ;;  %p1344_p0 = scmp.ne.s32.totalorder %s1697_s7, %s1343_s25  ;;  %s106_s13 = int_to_ptr.vmem [resolvable:$true] %s105_s13 }
  0x7b   :  { %p1347_p1 = scmp.lt.u32.totalorder %s1343_s25, %s1697_s7 }
  0x7d   :  { %p1349_p2 = pnand %p1347_p1, %p1344_p0 }
  0x7f   :  { %1352 = shalt.err (!%p1349_p2)
}
  0x80   :  { %s1353_s9 = scalar_lea.vmem %s106_s13, 16  ;;  %s1357_s6 = scalar_lea.vmem %s106_s13, 32 }
  0x81   :  { %p1354_p3 = scmp.ne.s32.totalorder %s106_s13, %s1353_s9  ;;  %p1358_p4 = scmp.lt.s32.totalorder %s106_s13, %s106_s13 }
  0x82   :  { %p1359_p5 = scmp.lt.s32.totalorder %s1357_s6, %s1353_s9 }
  0x84   :  { %p1360_p6 = por %p1359_p5, %p1358_p4 }
  0x86   :  { %p1361_p7 = pnand %p1360_p6, %p1354_p3 }
  0x88   :  { %1364 = shalt.err (!%p1361_p7)
}
  0x89   :  { %108 = dma.hbm_to_vmem [thread:$0]  %s1697_s7, 16, %s106_s13, [#allocation15]  }
  0x8a   :  { %1387 = dma.done.wait [#allocation3], 256  }
  0x8b   :  { %1388 = vsyncadd [#allocation3], 4294967040 }
  0x8c   :  { %1389 = dma.done.wait [#allocation6], 1280  }
  0x8d   :  { %1390 = vsyncadd [#allocation6], 4294966016 }
  0x8e   :  { %1391 = dma.done.wait [#allocation9], 1040  }
  0x8f   :  { %1392 = vsyncadd [#allocation9], 4294966256 }
  0x90   :  { %1393 = dma.done.wait [#allocation12], 1040  }
  0x91   :  { %1394 = vsyncadd [#allocation12], 4294966256 }
  0x92   :  { %1395 = dma.done.wait [#allocation15], 16  }
  0x93   :  { %1396 = vsyncadd [#allocation15], 4294967280  ;;  %v1411_v0 = vmov 0.0   ;;  %vm1412_vm0 = vmmov 0   ;;  %v134_v1 = vld [vmem:[#allocation2] sm:$0xff]  ;;  %v1146_v4 = vld [vmem:[#allocation7 + $0x8] sm:$0xff]   ;;  %v265_v50 = vlaneseq }
  0x94   :  { %1028 = vmatprep.subr.bf16.mxu1 %v1411_v0  ;;  %1030 = vmatprep.mubr.msk.bf16.mxu1 %vm1412_vm0, %v1411_v0  ;;  %v136_v2 = vpack.c.bf16 %v134_v1, %v134_v1  ;;  %v1145_v3 = vld [vmem:[#allocation7] sm:$0xff]   ;;  %v135_v5 = vld [vmem:[#allocation2 + $0x8] sm:$0xff]  ;;  %v1147_v7 = vld [vmem:[#allocation7 + $0x10] sm:$0xff]   ;;  %vm220_vm1 = vcmask 64512   ;;  %vm437_vm7 = vcmask 1043456   ;;  %vm738_vm8 = vcmask 7168  }
  0x95   :  { %1040 = vmatprep.subr.bf16.mxu0 %v1411_v0  ;;  %1056 = vmatprep.mubr.msk.bf16.mxu0 %vm1412_vm0, %v1411_v0  ;;  %v137_v6 = vpack.c.bf16 %v135_v5, %v135_v5  ;;  %v1148_v8 = vld [vmem:[#allocation7 + $0x18] sm:$0xff]   ;;  %v1149_v9 = vld [vmem:[#allocation7 + $0x20] sm:$0xff]   ;;  %v1150_v10 = vld [vmem:[#allocation7 + $0x28] sm:$0xff]   ;;  %v987_v13 = vpack.c.bf16 %v135_v5, %v134_v1  ;;  %v1615_v54 = vshrl.u32 %v265_v50, 7  ;;  %v268_v55 = vand.u32 127, %v265_v50  ;;  %s1415_s7 = smov [#allocation16]  }
  0x96   :  { %1029 = vmatpush3.bf16.xpose.msra.mxu1 %v136_v2  ;;  %1041 = vmatpush3.bf16.msra.mxu0 %v1145_v3  ;;  %v1151_v11 = vld [vmem:[#allocation7 + $0x30] sm:$0xff]   ;;  %v1152_v12 = vld [vmem:[#allocation7 + $0x38] sm:$0xff]   ;;  %vm804_vm9 = vcmask 1041409   ;;  %s934_s26 = sshll.u32 %s1415_s7, 4  ;;  %s935_s26 = int_to_ptr.vmem [resolvable:$true] %s934_s26 }
  0x97   :  { %1034 = vmatprep.subr.bf16.mxu1 %v1411_v0  ;;  %1042 = vmatprep.subr.bf16.mxu0 %v1411_v0  ;;  %vm269_vm2 = vcmp.eq.s32.totalorder %v1615_v54, %v268_v55  ;;  %v138_v50 = vld [vmem:[#allocation5] sm:$0xff]  ;;  %s1365_s10 = scalar_lea.vmem %s935_s26, 32  ;;  %p1370_p9 = scmp.lt.s32.totalorder %s935_s26, %s935_s26 }
  0x98   :  { %v950_v60 = vsel %vm269_vm2, 1.0, %v1411_v0  ;;  %p1366_p8 = scmp.ne.s32.totalorder %s935_s26, %s1365_s10  ;;  %p1371_p10 = scmp.lt.s32.totalorder %s1365_s10, %s1365_s10 }
  0x99   :  { %v272_v63 = vpack.c.bf16 %v950_v60, %v950_v60 }
  0x9a   :  { %1043 = vmatpush3.bf16.msra.mxu0 %v1146_v4  ;;  %p1372_p11 = por %p1371_p10, %p1370_p9 }
  0x9b   :  { %1044 = vmatprep.subr.bf16.mxu0 %v1411_v0 }
  0x9c   :  { %p1373_p12 = pnand %p1372_p11, %p1366_p8 }
  0x9d   :  { %1031 = vmatmul.mubr.bf16.vlgmr.msra.gmra.mrb[0].mxu1 %v136_v2 }
  0x9e   :  { %1035 = vmatpush3.bf16.xpose.msra.mxu1 %v137_v6  ;;  %1036 = vmatprep.mubr.msk.bf16.mxu1 %vm1412_vm0, %v1411_v0 }
  0x9f   :  { %1045 = vmatpush3.bf16.msra.mxu0 %v1147_v7  ;;  %1060 = vmatprep.subr.bf16.mxu1 %v1411_v0 }
  0xa0   :  { %1046 = vmatprep.subr.bf16.mxu0 %v1411_v0 }
  0xa3   :  { %1047 = vmatpush3.bf16.msra.mxu0 %v1148_v8 }
  0xa4   :  { %1048 = vmatprep.subr.bf16.mxu0 %v1411_v0 }
  0xa5   :  { %1037 = vmatmul.mubr.bf16.vlgmr.msra.gmra.mrb[4].mxu1 %v137_v6 }
  0xa6   :  { %1062 = vmatprep.mubr.msk.bf16.mxu1 %vm1412_vm0, %v1411_v0 }
  0xa7   :  { %1049 = vmatpush3.bf16.msra.mxu0 %v1149_v9 }
  0xa8   :  { %1050 = vmatprep.subr.bf16.mxu0 %v1411_v0 }
  0xab   :  { %1051 = vmatpush3.bf16.msra.mxu0 %v1150_v10 }
  0xac   :  { %1052 = vmatprep.subr.bf16.mxu0 %v1411_v0 }
  0xaf   :  { %1053 = vmatpush3.bf16.msra.mxu0 %v1151_v11 }
  0xb0   :  { %1054 = vmatprep.subr.bf16.mxu0 %v1411_v0 }
  0xb3   :  { %1055 = vmatpush3.bf16.msra.mxu0 %v1152_v12 }
  0xb4   :  { %1098 = vmatprep.subr.bf16.mxu0 %v1411_v0 }
  0xb6   :  { %1057 = vmatmul.mubr.bf16.vlgmr.msra.gmra.mrb[0].mxu0 %v987_v13 }
  0xb7   :  { %1100 = vmatprep.mubr.msk.bf16.mxu0 %vm1412_vm0, %v1411_v0 }
 0x170   :  { %v174_v14 = vpop.f32.mrb[0].mxu1 }
 0x171   :  { %v221_v15 = vsel %vm220_vm1, %v174_v14, -inf  ;;  %v1032_v16 = vpop.f32.mrb[1].mxu1 }
 0x172   :  { %v222_v17 = vrot.slane %v221_v15, 4  ;;  %v177_v18 = vpop.f32.mrb[2].mxu1 }
 0x173   :  { %v1033_v19 = vpop.f32.mrb[3].mxu1 }
 0x174   :  { %v223_v20 = vmax.f32 %v221_v15, %v222_v17 }
 0x176   :  { %v224_v21 = vrot.slane %v223_v20, 2 }
 0x178   :  { %v225_v22 = vmax.f32 %v223_v20, %v224_v21  ;;  %v214_v23 = vpop.f32.mrb[4].mxu1 }
 0x179   :  { %v228_v24 = vsel %vm220_vm1, %v214_v23, -inf  ;;  %v1038_v25 = vpop.f32.mrb[5].mxu1 }
 0x17a   :  { %v226_v26 = vrot.slane %v225_v22, 1  ;;  %v229_v27 = vrot.slane %v228_v24, 4  ;;  %v217_v28 = vpop.f32.mrb[6].mxu1 }
 0x17b   :  { %v1039_v29 = vpop.f32.mrb[7].mxu1  ;;  %v1155_v28 = vld [vmem:[#allocation10 + $0x10] sm:$0xff]  }
 0x17c   :  { %v227_v30 = vmax.f32 %v225_v22, %v226_v26  ;;  %v230_v31 = vmax.f32 %v228_v24, %v229_v27  ;;  %v1153_v26 = vld [vmem:[#allocation10] sm:$0xff]   ;;  %v1154_v27 = vld [vmem:[#allocation10 + $0x8] sm:$0xff]   ;;  %v1156_v29 = vld [vmem:[#allocation10 + $0x18] sm:$0xff]  }
 0x17e   :  { %v235_v32 = vsub.f32 %v174_v14, %v227_v30  ;;  %v231_v33 = vrot.slane %v230_v31, 2  ;;  %v1157_v30 = vld [vmem:[#allocation10 + $0x20] sm:$0xff]  }
 0x180   :  { %v237_v34 = vmul.f32 1.442695, %v235_v32  ;;  %v232_v35 = vmax.f32 %v230_v31, %v231_v33  ;;  %v1158_v31 = vld [vmem:[#allocation10 + $0x28] sm:$0xff]   ;;  %v1159_v32 = vld [vmem:[#allocation10 + $0x30] sm:$0xff]   ;;  %v1160_v33 = vld [vmem:[#allocation10 + $0x38] sm:$0xff]  }
 0x182   :  { %1169 = vpow2.f32 %v237_v34  ;;  %v233_v36 = vrot.slane %v232_v35, 1 }
 0x184   :  { %v234_v37 = vmax.f32 %v232_v35, %v233_v36 }
 0x186   :  { %v236_v38 = vsub.f32 %v214_v23, %v234_v37 }
 0x188   :  { %v239_v39 = vmul.f32 1.442695, %v236_v38 }
 0x189   :  { %v423_v12 = vpop.f32.mrb[0].mxu0 }
 0x18a   :  { %1171 = vpow2.f32 %v239_v39  ;;  %v1058_v13 = vpop.f32.mrb[1].mxu0  ;;  %v962_v39 = vld [vmem:[#allocation8] ss:$0 sm:$0xff] }
 0x18b   :  { %v426_v14 = vpop.f32.mrb[2].mxu0 }
 0x18c   :  { %v1170_v40 = vpop.eup %1169  ;;  %v1059_v15 = vpop.f32.mrb[3].mxu0 }
 0x18d   :  { %v241_v41 = vsel %vm220_vm1, %v1170_v40, 0.0 }
 0x18e   :  { %v242_v42 = vrot.slane %v241_v41, 4 }
 0x190   :  { %v243_v43 = vadd.f32 %v242_v42, %v241_v41 }
 0x192   :  { %v244_v44 = vrot.slane %v243_v43, 2 }
 0x194   :  { %v1172_v45 = vpop.eup %1171  ;;  %v245_v46 = vadd.f32 %v244_v44, %v243_v43 }
 0x195   :  { %v248_v47 = vsel %vm220_vm1, %v1172_v45, 0.0 }
 0x196   :  { %v246_v48 = vrot.slane %v245_v46, 1  ;;  %v249_v49 = vrot.slane %v248_v47, 4 }
 0x198   :  { %v247_v51 = vadd.f32 %v246_v48, %v245_v46  ;;  %v250_v52 = vadd.f32 %v249_v49, %v248_v47 }
 0x19a   :  { %1173 = vrcp.f32 %v247_v51  ;;  %v251_v53 = vrot.slane %v250_v52, 2  ;;  %v255_v59 = vmul.f32 0.1, %v247_v51  ;;  %v139_v51 = vld [vmem:[#allocation5 + $0x8] sm:$0xff] }
 0x19b   :  { %v746_v55 = vsel %vm738_vm8, %v139_v51, 0.0 }
 0x19c   :  { %v252_v56 = vadd.f32 %v251_v53, %v250_v52  ;;  %vm257_vm3 = vcmp.gt.f32.partialorder %v1170_v40, %v255_v59  ;;  %v1413_v52 = vmov 0   ;;  %v739_v53 = vsel %vm738_vm8, %v138_v50, 0.0 }
 0x19d   :  { %vm273_vm4 = vmpackc.low %vm257_vm3, %vm257_vm3  ;;  %1143 = vset.pattern.permute.xlu1 %v1413_v52  ;;  %1144 = vset.pattern.permute.xlu0 %v1413_v52 }
 0x19e   :  { %v253_v57 = vrot.slane %v252_v56, 1  ;;  %755 = vperm.xlu1 %1143, %v138_v50  }
 0x1a0   :  { %v254_v58 = vadd.f32 %v253_v57, %v252_v56  ;;  %v740_v56 = vrot.slane %v739_v53, 4  ;;  %v747_v57 = vrot.slane %v746_v55, 4 }
 0x1a2   :  { %1175 = vrcp.f32 %v254_v58  ;;  %v256_v3 = vmul.f32 0.1, %v254_v58  ;;  %v741_v58 = vadd.f32 %v740_v56, %v739_v53  ;;  %v748_v59 = vadd.f32 %v747_v57, %v746_v55  ;;  %760 = vperm.xlu1 %1143, %v139_v51  }
 0x1a4   :  { %v1174_v61 = vpop.eup %1173  ;;  %vm258_vm5 = vcmp.gt.f32.partialorder %v1172_v45, %v256_v3  ;;  %v742_v60 = vrot.slane %v741_v58, 2 }
 0x1a5   :  { %v261_v62 = vmul.f32 %v1174_v61, %v1170_v40  ;;  %vm274_vm6 = vmpackc.low %vm258_vm5, %vm258_vm5  ;;  %v749_v61 = vrot.slane %v748_v59, 2 }
 0x1a7   :  { %v263_v1 = vpack.c.bf16 %v261_v62, %v261_v62  ;;  %v743_v62 = vadd.f32 %v742_v60, %v741_v58 }
 0x1a9   :  { %v1619_v2 = vsel %vm273_vm4, %v263_v1, %v272_v63  ;;  %v744_v1 = vrot.slane %v743_v62, 1 }
 0x1aa   :  { %v277_v4 = vunpack.c.l.bf16 %v1619_v2 }
 0x1ac   :  { %v1176_v5 = vpop.eup %1175  ;;  %v279_v6 = vsel %vm220_vm1, %v277_v4, 0.0  ;;  %v745_v4 = vadd.f32 %v744_v1, %v743_v62  ;;  %v975_v1 = vld [vmem:[#allocation14] ss:$0 sm:$0xff] }
 0x1ad   :  { %280 = vadd.xlane.f32.xlu0 %v279_v6  ;;  %v262_v7 = vmul.f32 %v1176_v5, %v1172_v45 }
 0x1af   :  { %v264_v8 = vpack.c.bf16 %v262_v7, %v262_v7 }
 0x1b1   :  { %v1623_v9 = vsel %vm274_vm6, %v264_v8, %v272_v63  ;;  %v750_v63 = vadd.f32 %v749_v61, %v748_v59 }
 0x1b2   :  { %v278_v10 = vunpack.c.l.bf16 %v1623_v9 }
 0x1b3   :  { %v751_v3 = vrot.slane %v750_v63, 1 }
 0x1b4   :  { %v282_v11 = vsel %vm220_vm1, %v278_v10, 0.0 }
 0x1b5   :  { %283 = vadd.xlane.f32.xlu0 %v282_v11  ;;  %v752_v5 = vadd.f32 %v751_v3, %v750_v63 }
 0x23a   :  { %v281_v16 = vpop.xlane.xlu0 %280 }
 0x23b   :  { %1177 = vrsqrt.f32 %v281_v16 }
 0x242   :  { %v284_v17 = vpop.xlane.xlu0 %283 }
 0x243   :  { %1179 = vrsqrt.f32 %v284_v17 }
 0x244   :  { %1181 = vrcp.f32 %v745_v4 }
 0x245   :  { %v1627_v18 = vpop.eup %1177  ;;  %1183 = vrcp.f32 %v752_v5 }
 0x246   :  { %v430_v19 = vmul.f32 %v1627_v18, %v423_v12 }
 0x248   :  { %v432_v20 = vpack.c.bf16 %v430_v19, %v430_v19 }
 0x24a   :  { %v439_v21 = vsel %vm437_vm7, %v432_v20, 0  ;;  %v1161_v20 = vld [vmem:[#allocation13] sm:$0xff]  }
 0x24b   :  { %1061 = vmatpush3.bf16.msra.mxu1 %v439_v21  ;;  %v1162_v21 = vld [vmem:[#allocation13 + $0x8] sm:$0xff]  }
 0x24c   :  { %1066 = vmatprep.subr.bf16.mxu1 %v1411_v0 }
 0x24d   :  { %v1632_v22 = vpop.eup %1179 }
 0x24e   :  { %v431_v23 = vmul.f32 %v1632_v22, %v426_v14  ;;  %1063 = vmatmul.mubr.msk.bf16.vlgmr.msra.gmra.mrb[8].mxu1 %vm220_vm1, %v1619_v2  ;;  %v1182_v6 = vpop.eup %1181 }
 0x24f   :  { %1068 = vmatprep.mubr.msk.bf16.mxu1 %vm1412_vm0, %v1411_v0  ;;  %v1184_v7 = vpop.eup %1183  ;;  %781 = vperm.xlu0 %1144, %v1182_v6  }
 0x250   :  { %v433_v24 = vpack.c.bf16 %v431_v23, %v431_v23  ;;  %786 = vperm.xlu1 %1143, %v1184_v7   ;;  %v1163_v23 = vld [vmem:[#allocation13 + $0x10] sm:$0xff]  }
 0x252   :  { %v485_v25 = vsel %vm437_vm7, %v433_v24, 0  ;;  %v1165_v24 = vld [vmem:[#allocation13 + $0x20] sm:$0xff]  }
 0x253   :  { %1067 = vmatpush3.bf16.msra.mxu1 %v485_v25  ;;  %v1167_v25 = vld [vmem:[#allocation13 + $0x30] sm:$0xff]  }
 0x254   :  { %1072 = vmatprep.subr.bf16.mxu1 %v1411_v0 }
 0x256   :  { %1069 = vmatmul.mubr.msk.bf16.vlgmr.msra.gmra.mrb[12].mxu1 %vm220_vm1, %v1623_v9 }
 0x257   :  { %1073 = vmatpush3.bf16.msra.mxu1 %v1153_v26  ;;  %1088 = vmatprep.mubr.msk.bf16.mxu1 %vm1412_vm0, %v1411_v0  ;;  %v1168_v26 = vld [vmem:[#allocation13 + $0x38] sm:$0xff]  }
 0x258   :  { %1074 = vmatprep.subr.bf16.mxu1 %v1411_v0 }
 0x25b   :  { %1075 = vmatpush3.bf16.msra.mxu1 %v1154_v27  ;;  %v756_v27 = vpop.permute.xlu1 %755 }
 0x25c   :  { %1076 = vmatprep.subr.bf16.mxu1 %v1411_v0 }
 0x25f   :  { %1077 = vmatpush3.bf16.msra.mxu1 %v1155_v28 }
 0x260   :  { %1078 = vmatprep.subr.bf16.mxu1 %v1411_v0 }
 0x263   :  { %1079 = vmatpush3.bf16.msra.mxu1 %v1156_v29  ;;  %v974_v29 = vld [vmem:[#allocation11] ss:$0 sm:$0xff] }
 0x264   :  { %1080 = vmatprep.subr.bf16.mxu1 %v1411_v0 }
 0x267   :  { %1081 = vmatpush3.bf16.msra.mxu1 %v1157_v30 }
 0x268   :  { %1082 = vmatprep.subr.bf16.mxu1 %v1411_v0 }
 0x26b   :  { %1083 = vmatpush3.bf16.msra.mxu1 %v1158_v31 }
 0x26c   :  { %1084 = vmatprep.subr.bf16.mxu1 %v1411_v0 }
 0x26f   :  { %1085 = vmatpush3.bf16.msra.mxu1 %v1159_v32 }
 0x270   :  { %1086 = vmatprep.subr.bf16.mxu1 %v1411_v0 }
 0x273   :  { %1087 = vmatpush3.bf16.msra.mxu1 %v1160_v33 }
 0x274   :  { %1092 = vmatprep.subr.bf16.mxu1 %v1411_v0 }
 0x2ce   :  { %v782_v51 = vpop.permute.xlu0 %781 }
 0x321   :  { %v475_v34 = vpop.f32.mrb[8].mxu1 }
 0x322   :  { %v1064_v35 = vpop.f32.mrb[9].mxu1  ;;  %v527_v38 = vmul.f32 %v1627_v18, %v475_v34 }
 0x323   :  { %v478_v36 = vpop.f32.mrb[10].mxu1 }
 0x324   :  { %v1065_v37 = vpop.f32.mrb[11].mxu1  ;;  %v536_v41 = vadd.f32 %v962_v39, %v527_v38 }
 0x326   :  { %v538_v47 = vmax.f32 %v536_v41, 0.0 }
 0x329   :  { %v521_v40 = vpop.f32.mrb[12].mxu1 }
 0x32a   :  { %v528_v42 = vmul.f32 %v1632_v22, %v521_v40  ;;  %v1070_v43 = vpop.f32.mrb[13].mxu1 }
 0x32b   :  { %v524_v44 = vpop.f32.mrb[14].mxu1 }
 0x32c   :  { %v537_v45 = vadd.f32 %v962_v39, %v528_v42  ;;  %v1071_v46 = vpop.f32.mrb[15].mxu1 }
 0x32e   :  { %v539_v48 = vmax.f32 %v537_v45, 0.0 }
 0x330   :  { %v988_v49 = vpack.c.bf16 %v539_v48, %v538_v47 }
 0x332   :  { %1089 = vmatmul.mubr.bf16.vlgmr.msra.gmra.mrb[16].mxu1 %v988_v49 }
 0x333   :  { %1094 = vmatprep.mubr.msk.bf16.mxu1 %vm1412_vm0, %v1411_v0 }
 0x405   :  { %v630_v8 = vpop.f32.mrb[16].mxu1 }
 0x406   :  { %v637_v10 = vmul.f32 %v1627_v18, %v630_v8  ;;  %v1090_v11 = vpop.f32.mrb[17].mxu1 }
 0x407   :  { %v633_v12 = vpop.f32.mrb[18].mxu1 }
 0x408   :  { %v639_v13 = vpack.c.bf16 %v637_v10, %v637_v10  ;;  %v638_v14 = vmul.f32 %v1632_v22, %v633_v12  ;;  %v1091_v15 = vpop.f32.mrb[19].mxu1  ;;  %v1414_v12 = vmov 1966171168  }
 0x40a   :  { %v642_v16 = vsel %vm437_vm7, %v639_v13, 0  ;;  %v640_v17 = vpack.c.bf16 %v638_v14, %v638_v14  ;;  %v904_v13 = vunpack.c.l.s4 %v1414_v12 }
 0x40b   :  { %1093 = vmatpush3.bf16.msra.mxu1 %v642_v16 }
 0x40c   :  { %v685_v19 = vsel %vm437_vm7, %v640_v17, 0  ;;  %v905_v14 = vunpack.c.0.s8 %v904_v13 }
 0x40d   :  { %1099 = vmatpush3.bf16.msra.mxu0 %v685_v19 }
 0x40e   :  { %1095 = vmatmul.mubr.msk.bf16.vlgmr.msra.gmra.mrb[20].mxu1 %vm220_vm1, %v1619_v2  ;;  %1104 = vmatprep.subr.bf16.mxu0 %v1411_v0  ;;  %v1164_v2 = vld [vmem:[#allocation13 + $0x18] sm:$0xff]   ;;  %v908_v15 = vsub.s32 %v905_v14, %v1615_v54 }
 0x410   :  { %1101 = vmatmul.mubr.msk.bf16.vlgmr.msra.gmra.mrb[4].mxu0 %vm220_vm1, %v1623_v9  ;;  %v1166_v9 = vld [vmem:[#allocation13 + $0x28] sm:$0xff]  }
 0x411   :  { %1105 = vmatpush3.bf16.msra.mxu0 %v1161_v20  ;;  %1120 = vmatprep.mubr.msk.bf16.mxu0 %vm1412_vm0, %v1411_v0 }
 0x412   :  { %1106 = vmatprep.subr.bf16.mxu0 %v1411_v0 }
 0x415   :  { %1107 = vmatpush3.bf16.msra.mxu0 %v1162_v21 }
 0x416   :  { %1108 = vmatprep.subr.bf16.mxu0 %v1411_v0 }
 0x419   :  { %1109 = vmatpush3.bf16.msra.mxu0 %v1163_v23 }
 0x41a   :  { %1110 = vmatprep.subr.bf16.mxu0 %v1411_v0 }
 0x41d   :  { %1111 = vmatpush3.bf16.msra.mxu0 %v1164_v2 }
 0x41e   :  { %1112 = vmatprep.subr.bf16.mxu0 %v1411_v0 }
 0x421   :  { %1113 = vmatpush3.bf16.msra.mxu0 %v1165_v24 }
 0x422   :  { %1114 = vmatprep.subr.bf16.mxu0 %v1411_v0 }
 0x425   :  { %1115 = vmatpush3.bf16.msra.mxu0 %v1166_v9 }
 0x426   :  { %1116 = vmatprep.subr.bf16.mxu0 %v1411_v0 }
 0x429   :  { %1117 = vmatpush3.bf16.msra.mxu0 %v1167_v25 }
 0x42a   :  { %1118 = vmatprep.subr.bf16.mxu0 %v1411_v0  ;;  %v761_v0 = vpop.permute.xlu1 %760 }
 0x42d   :  { %1119 = vmatpush3.bf16.msra.mxu0 %v1168_v26 }
 0x42e   :  { %v787_v56 = vpop.permute.xlu1 %786 }
 0x4e1   :  { %v678_v28 = vpop.f32.mrb[20].mxu1 }
 0x4e2   :  { %v727_v30 = vmul.f32 %v1627_v18, %v678_v28  ;;  %v1096_v31 = vpop.f32.mrb[21].mxu1 }
 0x4e3   :  { %v681_v32 = vpop.f32.mrb[22].mxu1  ;;  %v721_v33 = vpop.f32.mrb[4].mxu0 }
 0x4e4   :  { %v736_v34 = vadd.f32 %v974_v29, %v727_v30  ;;  %v728_v35 = vmul.f32 %v1632_v22, %v721_v33  ;;  %v1097_v36 = vpop.f32.mrb[23].mxu1  ;;  %v1102_v37 = vpop.f32.mrb[5].mxu0 }
 0x4e5   :  { %v724_v38 = vpop.f32.mrb[6].mxu0 }
 0x4e6   :  { %v763_v39 = vmul.f32 %v756_v27, %v736_v34  ;;  %v737_v40 = vadd.f32 %v974_v29, %v728_v35  ;;  %v1103_v41 = vpop.f32.mrb[7].mxu0 }
 0x4e8   :  { %v765_v42 = vrot.slane %v763_v39, 4  ;;  %v764_v43 = vmul.f32 %v761_v0, %v737_v40 }
 0x4ea   :  { %v771_v44 = vrot.slane %v764_v43, 4  ;;  %v766_v45 = vadd.f32 %v765_v42, %v763_v39 }
 0x4ec   :  { %v772_v46 = vadd.f32 %v771_v44, %v764_v43  ;;  %v767_v47 = vrot.slane %v766_v45, 2 }
 0x4ee   :  { %v773_v18 = vrot.slane %v772_v46, 2  ;;  %v768_v48 = vadd.f32 %v767_v47, %v766_v45 }
 0x4f0   :  { %v774_v49 = vadd.f32 %v773_v18, %v772_v46  ;;  %v769_v50 = vrot.slane %v768_v48, 1 }
 0x4f2   :  { %v775_v52 = vrot.slane %v774_v49, 1  ;;  %v770_v22 = vadd.f32 %v769_v50, %v768_v48 }
 0x4f4   :  { %v776_v53 = vadd.f32 %v775_v52, %v774_v49  ;;  %v789_v55 = vmul.f32 %v782_v51, %v770_v22 }
 0x4f6   :  { %v790_v57 = vmul.f32 %v787_v56, %v776_v53  ;;  %v791_v58 = vpack.c.bf16 %v789_v55, %v789_v55 }
 0x4f8   :  { %v792_v59 = vpack.c.bf16 %v790_v57, %v790_v57  ;;  %v802_v61 = vunpack.c.l.b16 %v791_v58 }
 0x4fa   :  { %v803_v60 = vunpack.c.l.b16 %v792_v59 }
 0x4fc   :  { %v805_v62 = vsel %vm804_vm9, %v803_v60, %v802_v61 }
 0x4fd   :  { %v806_v63 = vpack.c.b16 %v805_v62, %v805_v62 }
 0x4ff   :  { %1121 = vmatmul.mubr.bf16.vlgmr.msra.gmra.mrb[8].mxu0 %v806_v63 }
 0x5d2   :  { %v890_v3 = vpop.f32.mrb[8].mxu0 }
 0x5d3   :  { %v891_v4 = vadd.f32 %v975_v1, %v890_v3  ;;  %v1122_v5 = vpop.f32.mrb[9].mxu0 }
 0x5d4   :  { %v893_v6 = vpop.f32.mrb[10].mxu0 }
 0x5d5   :  { %v984_v7 = vmul.f32 -1.442695, %v891_v4  ;;  %v1123_v8 = vpop.f32.mrb[11].mxu0 }
 0x5d7   :  { %1185 = vpow2.f32 %v984_v7 }
 0x5e1   :  { %v1186_v10 = vpop.eup %1185 }
 0x5e2   :  { %v899_v11 = vadd.f32 1.0, %v1186_v10 }
 0x5e4   :  { %1187 = vrcp.f32 %v899_v11 }
 0x5ee   :  { %v1188_v16 = vpop.eup %1187 }
 0x5ef   :  { %v909_v17 = vrot.slane %v1188_v16, %v908_v15 }
 0x5f1   :  { %v910_v19 = vcombine.high %v909_v17, %v909_v17  ;;  %985 = vst.sshfl [vmem:[#allocation16] sm:$0x1 pattern:$0x73625140] %v909_v17 }
 0x5f3   :  { %986 = vst.sshfl [vmem:[#allocation16 + $0x1] sm:$0x1 pattern:$0x73625140] %v910_v19 }
 0x5f4   :  { %1376 = shalt.err (!%p1373_p12)
}
 0x5f5   :  { %s1377_s11 = scalar_lea.hbm %s1698_s8, 32 }
 0x5f6   :  { %p1378_p13 = scmp.ne.s32.totalorder %s1698_s8, %s1377_s11  ;;  %p1381_p0 = scmp.lt.u32.totalorder %s1377_s11, %s1698_s8 }
 0x5f8   :  { %p1383_p1 = pnand %p1381_p0, %p1378_p13 }
 0x5fa   :  { %1386 = shalt.err (!%p1383_p1)
}
 0x5fb   :  { %s1416_s19 = smov 16   ;;  %s1417_s20 = smov 1  }
 0x5fc   :  { %940 = dma.vmem_to_hbm [thread:$0]  %s935_s26, 32, %s1698_s8, [#allocation4], %s1416_s19, %s1416_s19, %s1417_s20  }
 0x5fd   :  { %1397 = dma.done.wait [#allocation4], 32  }
 0x5fe   :  { %1398 = vsyncadd [#allocation4], 4294967264 }
 0x5ff   :  { %944 = vsyncpa [#allocation3], 1 }
 0x600   :  { %945 = vsyncpa [#allocation6], 1 }
 0x601   :  { %946 = vsyncpa [#allocation9], 1 }
 0x602   :  { %947 = vsyncpa [#allocation12], 1 }
 0x603   :  { %948 = vsyncpa [#allocation15], 1 }
 0x604   :  { %949 = vsyncpa [#allocation4], 1 }

</bundles_post_ra>
